<compile_context>
chip_gen: v7x
topology: tpu7x:2x2x1
jax: 0.10.0
libtpu: 0.0.40
codegen_flags: <defaults>
</compile_context>

<pallas_src>
import jax
import jax.numpy as jnp
from jax import lax
from jax.experimental import pallas as pl
from jax.experimental.pallas import tpu as pltpu

IN_FEATURES = 20
OUT_FEATURES = 3

_LANE = 128
_MIB = 1024 * 1024


def _round_up(n, m):
    return ((n + m - 1) // m) * m


def linear_kernel(x_ref, w_ref, b_ref, o_ref):
    # x_ref: (tm, 20)  batch tile
    # w_ref: (3, 20)   resident weight (PyTorch layout; no host-side transpose)
    # b_ref: (3, 1)    resident bias column
    # o_ref: (3, tm)   transposed, lane-dense output tile
    yt = lax.dot_general(
        w_ref[...],
        x_ref[...],
        dimension_numbers=(((1,), (1,)), ((), ())),  # contract feature axes -> (3, tm)
        preferred_element_type=jnp.float32,
    )
    o_ref[...] = (yt + b_ref[...].astype(jnp.float32)).astype(o_ref.dtype)


def _choose_tile(B, itemsize, block_m, vmem_budget_bytes):
    """Pick a batch-tile size tm against the padded, double-buffered VMEM cost."""
    # Per batch row (double-buffered):
    #   x tile (tm, 20) lane-pads to (tm, 128); out tile (3, tm) sublane-pads to (8, tm).
    per_row = 2 * (_LANE + 8) * itemsize
    tm_fit = max(_LANE, (vmem_budget_bytes // per_row) // _LANE * _LANE)
    tm = min(_round_up(block_m, _LANE), tm_fit)
    if B <= tm:
        if B > 2 * _LANE:
            # Split into (at least) two 128-aligned tiles so the "parallel"
            # batch axis feeds both TensorCores on v7x.
            return _round_up(pl.cdiv(B, 2), _LANE)
        return B  # full-array block (legal for any B / dtype)
    return tm


def tadpole_simple_forward(x, weight, bias, *, block_m=16384,
                           vmem_budget_bytes=24 * _MIB):
    """x: (B, 20), weight: (3, 20), bias: (3,) -> (B, 3)."""
    B = x.shape[0]
    itemsize = jnp.dtype(x.dtype).itemsize
    tm = _choose_tile(B, itemsize, block_m, vmem_budget_bytes)
    grid_m = pl.cdiv(B, tm)

    b2 = bias.reshape(OUT_FEATURES, 1)  # (3, 1): broadcasts along lanes in-kernel

    # Explicit scoped-VMEM limit from the padded double-buffered footprint
    # (>= 32 MiB so big tiles clear the v5e 16 MiB default; <= 48 MiB so we
    #  stay under v7x's 64 MiB physical VMEM).
    footprint = 2 * tm * (_LANE + 8) * itemsize + 64 * 1024
    vmem_limit = int(min(48 * _MIB, max(32 * _MIB, footprint + 4 * _MIB)))

    out_t = pl.pallas_call(
        linear_kernel,
        out_shape=jax.ShapeDtypeStruct((OUT_FEATURES, B), x.dtype),
        grid=(grid_m,),
        in_specs=[
            pl.BlockSpec((tm, IN_FEATURES), lambda i: (i, 0)),
            pl.BlockSpec((OUT_FEATURES, IN_FEATURES), lambda i: (0, 0)),
            pl.BlockSpec((OUT_FEATURES, 1), lambda i: (0, 0)),
        ],
        out_specs=pl.BlockSpec((OUT_FEATURES, tm), lambda i: (0, i)),
        compiler_params=pltpu.CompilerParams(
            dimension_semantics=("parallel",),
            vmem_limit_bytes=vmem_limit,
        ),
    )(x, weight, b2)

    # Tiny glue transpose back to the module's (B, 3) interface.
    return out_t.T


if __name__ == "__main__":
    key = jax.random.PRNGKey(0)
    kx, kw, kb, kx2 = jax.random.split(key, 4)

    bound = 1.0 / (IN_FEATURES ** 0.5)
    weight = jax.random.uniform(
        kw, (OUT_FEATURES, IN_FEATURES), jnp.float32, minval=-bound, maxval=bound
    )
    bias = jax.random.uniform(
        kb, (OUT_FEATURES,), jnp.float32, minval=-bound, maxval=bound
    )

    # Small shape consistent with the module: B=20 rows of 20 features
    # (single full-array tile path).
    B = 20
    x = jax.random.normal(kx, (B, IN_FEATURES), jnp.float32)
    out = jax.block_until_ready(tadpole_simple_forward(x, weight, bias))
    ref = x @ weight.T + bias
    assert out.shape == (B, OUT_FEATURES)
    assert jnp.allclose(out, ref, atol=1e-5, rtol=1e-5)

    # Slightly larger batch to exercise the tiled path (two 128-row tiles,
    # masked partial last tile, two-TC split on v7x).
    B2 = 300
    x2 = jax.random.normal(kx2, (B2, IN_FEATURES), jnp.float32)
    out2 = jax.block_until_ready(tadpole_simple_forward(x2, weight, bias))
    ref2 = x2 @ weight.T + bias
    assert out2.shape == (B2, OUT_FEATURES)
    assert jnp.allclose(out2, ref2, atol=1e-5, rtol=1e-5)

    print("KERNEL_OK")
</pallas_src>

<mosaic_0001>
module attributes {stable_mosaic.version = 11 : i64} {
  func.func @linear_kernel(%arg0: i32, %arg1: memref<20x20xf32, #tpu.memory_space<vmem>>, %arg2: memref<3x20xf32, #tpu.memory_space<vmem>>, %arg3: memref<3x1xf32, #tpu.memory_space<vmem>>, %arg4: memref<3x20xf32, #tpu.memory_space<vmem>>) attributes {dimension_semantics = [#tpu.dimension_semantics<parallel>], iteration_bounds = array<i64: 1>, scalar_prefetch = 0 : i64, scratch_operands = 0 : i64, tpu.core_type = #tpu.core_type<tc>, window_params = [{transform_indices = @transform_0, window_bounds = array<i64: 20, 20>}, {pipeline_mode = #tpu.pipeline_mode<synchronous>, transform_indices = @transform_1, window_bounds = array<i64: 3, 20>}, {pipeline_mode = #tpu.pipeline_mode<synchronous>, transform_indices = @transform_2, window_bounds = array<i64: 3, 1>}, {transform_indices = @transform_3, window_bounds = array<i64: 3, 20>}]} {
    %c0 = arith.constant 0 : index
    %c0_0 = arith.constant 0 : index
    %0 = vector.load %arg2[%c0, %c0_0] : memref<3x20xf32, #tpu.memory_space<vmem>>, vector<3x20xf32>
    %c0_1 = arith.constant 0 : index
    %c0_2 = arith.constant 0 : index
    %1 = vector.load %arg1[%c0_1, %c0_2] : memref<20x20xf32, #tpu.memory_space<vmem>>, vector<20x20xf32>
    %cst = arith.constant dense<0.000000e+00> : vector<3x20xf32>
    %2 = tpu.matmul %0, %1, %cst {dimension_numbers = #tpu.dot_dimension_numbers<[1], [1], [0], [0], [0, 0, 1, 0], [], []>} : vector<3x20xf32>, vector<20x20xf32>, vector<3x20xf32> -> vector<3x20xf32>
    %c0_3 = arith.constant 0 : index
    %c0_4 = arith.constant 0 : index
    %3 = vector.load %arg3[%c0_3, %c0_4] : memref<3x1xf32, #tpu.memory_space<vmem>>, vector<3x1xf32>
    %4 = vector.broadcast %3 : vector<3x1xf32> to vector<3x20xf32>
    %5 = arith.addf %2, %4 : vector<3x20xf32>
    %c0_5 = arith.constant 0 : index
    %c0_6 = arith.constant 0 : index
    %6 = vector.load %arg4[%c0_5, %c0_6] : memref<3x20xf32, #tpu.memory_space<vmem>>, vector<3x20xf32>
    tpu.vector_store %arg4[%c0_5, %c0_6], %5 {strides = array<i32>} : memref<3x20xf32, #tpu.memory_space<vmem>>, vector<3x20xf32>,
    return
  }
  func.func @transform_0(%arg0: i32) -> (i32, i32) {
    %c0_i32 = arith.constant 0 : i32
    %c0_i32_0 = arith.constant 0 : i32
    return %arg0, %c0_i32 : i32, i32
  }
  func.func @transform_1(%arg0: i32) -> (i32, i32) {
    %c0_i32 = arith.constant 0 : i32
    %c0_i32_0 = arith.constant 0 : i32
    %c0_i32_1 = arith.constant 0 : i32
    return %c0_i32, %c0_i32_0 : i32, i32
  }
  func.func @transform_2(%arg0: i32) -> (i32, i32) {
    %c0_i32 = arith.constant 0 : i32
    %c0_i32_0 = arith.constant 0 : i32
    %c0_i32_1 = arith.constant 0 : i32
    return %c0_i32, %c0_i32_0 : i32, i32
  }
  func.func @transform_3(%arg0: i32) -> (i32, i32) {
    %c0_i32 = arith.constant 0 : i32
    %c0_i32_0 = arith.constant 0 : i32
    return %c0_i32, %arg0 : i32, i32
  }
}

</mosaic_0001>

<bundles_post_ra>
// kernel: tpu_custom_call.1
= control target key start
LH: loop header
LB: loop body
LE: loop exit
PB: predicated region body
PF: predicated region fallthrough
CT: control target
= control target key end

     0   :  { %8 = vsyncpa [#allocation3], 0  ;;  %s275_s0 = inlined_call_operand.hbm [shape: f32[20,20], index: 0, kind: input, shape index: {}]   ;;  %s276_s1 = inlined_call_operand.vmem [shape: f32[3,20], index: 1, kind: input, shape index: {}]   ;;  %s277_s2 = inlined_call_operand.vmem [shape: f32[3,1], index: 2, kind: input, shape index: {}]   ;;  %s278_s3 = inlined_call_operand.hbm [shape: f32[3,20], index: 3, kind: output, shape index: {}]  }
   0x1   :  { %9 = vsyncpa [#allocation4], 0  ;;  %s217_s12 = smov [#allocation2]   ;;  %s169_s16 = scalar_lea.hbm %s275_s0, 384 }
   0x2   :  { %s15_s13 = sshll.u32 %s217_s12, 4  ;;  %p170_p0 = scmp.ne.s32.totalorder %s275_s0, %s169_s16  ;;  %s16_s13 = int_to_ptr.vmem [resolvable:$true] %s15_s13 }
   0x3   :  { %p173_p1 = scmp.lt.u32.totalorder %s169_s16, %s275_s0 }
   0x5   :  { %p175_p2 = pnand %p173_p1, %p170_p0 }
   0x7   :  { %178 = shalt.err (!%p175_p2)
}
   0x8   :  { %s179_s21 = scalar_lea.vmem %s16_s13, 384  ;;  %p184_p4 = scmp.lt.s32.totalorder %s16_s13, %s16_s13 }
   0x9   :  { %p180_p3 = scmp.ne.s32.totalorder %s16_s13, %s179_s21  ;;  %p185_p5 = scmp.lt.s32.totalorder %s179_s21, %s179_s21 }
   0xb   :  { %p186_p6 = por %p185_p5, %p184_p4 }
   0xd   :  { %p187_p7 = pnand %p186_p6, %p180_p3 }
   0xf   :  { %190 = shalt.err (!%p187_p7)
}
  0x10   :  { %s218_s22 = smov 128   ;;  %s219_s23 = smov 8  }
  0x11   :  { %21 = dma.hbm_to_vmem [thread:$0]  %s275_s0, 384, %s16_s13, [#allocation3], %s218_s22, %s218_s22, %s219_s23  }
  0x12   :  { %213 = dma.done.wait [#allocation3], 384  }
  0x13   :  { %214 = vsyncadd [#allocation3], 4294966912  ;;  %v220_v0 = vmov 0.0|0.0   ;;  %vm221_vm0 = vmmov 0   ;;  %v222_v1 = vmov 0.0   ;;  %v223_v2 = vmov 0  }
  0x14   :  { %156 = vmatprep.subr.bf16.mxu0 %v220_v0  ;;  %153 = vmatprep.mubr.msk.f32.mxu0 %vm221_vm0, %v222_v1  ;;  %vm39_vm1 = vcmask 162816   ;;  %v30_v3 = vld [vmem:[#allocation2] sm:$0xff]  ;;  %v31_v4 = vld [vmem:[#allocation2 + $0x8] sm:$0xff]  ;;  %v32_v7 = vld [vmem:[#allocation2 + $0x10] sm:$0xf]  ;;  %s224_s29 = smov [#allocation5]  }
  0x15   :  { %168 = vset.pattern.permute.xlu0 %v223_v2  ;;  %vm158_vm2 = vmpackc.low %vm39_vm1, %vm39_vm1  ;;  %v157_v5 = vpack.c.bf16 %v31_v4, %v30_v3  ;;  %v33_v6 = vld [vmem:[%s277_s2] sm:$0x7]  ;;  %s130_s30 = sshll.u32 %s224_s29, 4  ;;  %vm122_vm3 = vcmask 157696   ;;  %s131_s30 = int_to_ptr.vmem [resolvable:$true] %s130_s30 }
  0x16   :  { %36 = vperm.xlu0 %168, %v33_v6   ;;  %v29_v8 = vld [vmem:[%s276_s1] sm:$0x7]  ;;  %s191_s2 = scalar_lea.vmem %s131_s30, 64  ;;  %p196_p9 = scmp.lt.s32.totalorder %s131_s30, %s131_s30 }
  0x17   :  { %159 = vmatpush3.bf16.xpose.msk.msra.mxu0 %vm158_vm2, %v157_v5  ;;  %p192_p8 = scmp.ne.s32.totalorder %s131_s30, %s191_s2  ;;  %p197_p10 = scmp.lt.s32.totalorder %s191_s2, %s191_s2 }
  0x18   :  { %151 = vmatprep.subr.mxu0 %v222_v1 }
  0x19   :  { %p198_p11 = por %p197_p10, %p196_p9 }
  0x1b   :  { %p199_p12 = pnand %p198_p11, %p192_p8 }
  0x1f   :  { %152 = vmatpush3.xpose.msk.msra.mxu0 %vm39_vm1, %v32_v7 }
  0x22   :  { %154 = vmatmul.mubr.msk.f32.vlgmr.msra.gmra.mrb[0].mxu0 %vm39_vm1, %v29_v8 }
  0x95   :  { %v37_v9 = vpop.permute.xlu0 %36 }
  0xf5   :  { %v118_v10 = vpop.f32.mrb[0].mxu0 }
  0xf6   :  { %v119_v11 = vadd.f32 %v118_v10, %v37_v9  ;;  %v155_v12 = vpop.f32.mrb[1].mxu0 }
  0xf8   :  { %123 = vst.msk [vmem:[#allocation5] sm:$0x7] %vm122_vm3, %v119_v11 }
  0xf9   :  { %202 = shalt.err (!%p199_p12)
}
  0xfa   :  { %s203_s1 = scalar_lea.hbm %s278_s3, 64 }
  0xfb   :  { %p204_p13 = scmp.ne.s32.totalorder %s278_s3, %s203_s1  ;;  %p207_p0 = scmp.lt.u32.totalorder %s203_s1, %s278_s3 }
  0xfd   :  { %p209_p1 = pnand %p207_p0, %p204_p13 }
  0xff   :  { %212 = shalt.err (!%p209_p1)
}
 0x100   :  { %133 = dma.vmem_to_hbm [thread:$0]  %s131_s30, 64, %s278_s3, [#allocation4]  }
 0x101   :  { %215 = dma.done.wait [#allocation4], 64  }
 0x102   :  { %216 = vsyncadd [#allocation4], 4294967232 }
 0x103   :  { %137 = vsyncpa [#allocation3], 1 }
 0x104   :  { %138 = vsyncpa [#allocation4], 1 }

</bundles_post_ra>
